<compile_context>
chip_gen: v6e
topology: v6e:2x2x1
jax: 0.10.0
libtpu: 0.0.40
codegen_flags: <defaults>
</compile_context>

<pallas_src>
import jax
import jax.numpy as jnp
from jax.experimental import pallas as pl
from jax.experimental.pallas import tpu as pltpu

LANE = 128
SUB = 8
H1 = 128       # first hidden width (already lane-aligned)
H2 = 64        # second hidden width (lane-padded to 128 at pack time)
H2_PAD = 128


def _round_up(n, m):
    return ((n + m - 1) // m) * m


def regret_mlp_kernel(x_ref, w1_ref, b1_ref, w2_ref, b2_ref, w3t_ref, b3t_ref, ot_ref):
    """Fused Linear -> ReLU -> Linear -> ReLU -> Linear for one batch tile.

    Layers 1/2: bf16 MXU inputs, f32 accumulation, full 128-lane tiles.
    Layer 3 is computed transposed (yt = w3t @ h2^T, w3t pre-transposed/padded to
    (out_sub, 128) f32) so the output tile is (out_sub, tb) with the batch on the
    lane axis -> unmasked lane-dense store and ~16x less HBM writeback.  The
    (tb,128)->(128,tb) transpose rides the otherwise-idle XLU slot.
    """
    x = x_ref[...].astype(jnp.bfloat16)
    h1 = jnp.dot(x, w1_ref[...], preferred_element_type=jnp.float32) + b1_ref[...]
    h1 = jnp.maximum(h1, 0.0)
    h2 = jnp.dot(h1.astype(jnp.bfloat16), w2_ref[...],
                 preferred_element_type=jnp.float32) + b2_ref[...]
    h2 = jnp.maximum(h2, 0.0)
    h2t = h2.T                                           # f32 (128, tb), XLU transpose
    yt = jnp.dot(w3t_ref[...], h2t,
                 preferred_element_type=jnp.float32) + b3t_ref[...]
    ot_ref[...] = yt.astype(ot_ref.dtype)


def init_params(key, input_dim, output_dim):
    """Deterministic init matching nn.Linear (uniform +-1/sqrt(fan_in)).
    Stored transposed relative to PyTorch: [in, out]."""
    dims = [(input_dim, H1), (H1, H2), (H2, output_dim)]
    params = {}
    for i, (fan_in, fan_out) in enumerate(dims, start=1):
        key, kw, kb = jax.random.split(key, 3)
        bound = 1.0 / jnp.sqrt(float(fan_in))
        params[f"w{i}"] = jax.random.uniform(
            kw, (fan_in, fan_out), jnp.float32, -bound, bound)
        params[f"b{i}"] = jax.random.uniform(
            kb, (1, fan_out), jnp.float32, -bound, bound)
    return params


def pack_params(params):
    """Lane-pad hidden2 to 128 and pre-transpose layer 3 (w3t: [out_sub, 128] f32,
    b3t: [out_sub, 1] f32) so the kernel emits the output batch-on-lanes.
    Zero pads are exact: padded h2 columns are relu(0)=0 and padded w3t rows/cols
    are 0, so padded output rows are identically 0 and are sliced off in the wrapper."""
    w1, b1 = params["w1"], params["b1"]                  # [in, 128], [1, 128]
    w2, b2 = params["w2"], params["b2"]                  # [128, 64], [1, 64]
    w3, b3 = params["w3"], params["b3"]                  # [64, out], [1, out]
    out_dim = w3.shape[1]
    out_sub = _round_up(out_dim, SUB)                    # pad out_dim only to 8 sublanes

    w2p = jnp.zeros((w2.shape[0], H2_PAD), jnp.float32).at[:, : w2.shape[1]].set(w2)
    b2p = jnp.zeros((1, H2_PAD), jnp.float32).at[:, : b2.shape[1]].set(b2)
    w3t = jnp.zeros((out_sub, H2_PAD), jnp.float32).at[:out_dim, : w3.shape[0]].set(w3.T)
    b3t = jnp.zeros((out_sub, 1), jnp.float32).at[:out_dim, 0].set(b3[0])

    packed = {
        "w1": w1.astype(jnp.bfloat16), "b1": b1.astype(jnp.float32),
        "w2": w2p.astype(jnp.bfloat16), "b2": b2p,
        "w3t": w3t, "b3t": b3t,                          # tiny, kept f32
    }
    return packed, out_dim


def regret_model_forward(x, packed, out_dim, *, tile_b=2048):
    """x: [B, input_dim] float32 -> [B, out_dim] float32.

    Perf-review changes applied:
      * transposed (out_sub, B) kernel output: unmasked lane-dense stores, ~16x less
        writeback, no padded-output re-slice pass (works well on v5e's single vst slot);
      * tile_b raised to 2048 to amortize ~0.35 us/step pipeline overhead, capped by a
        VMEM budget that stays under v5e's 16 MiB scoped-VMEM default;
      * >= 2 near-even batch tiles whenever B >= 256 so ("parallel",) shards across
        both TensorCores on v7x;
      * no wrapper batch-pad copy: grid = cdiv(B, tb); the ragged tail tile reads
        arbitrary rows past B, harmless for this row-wise MLP since the out-of-bounds
        output lanes are discarded on writeback.
    # TODO(synk): if the producer can emit x in bf16 natively, drop the in-kernel cast
    # and halve the (now dominant) input read; not done here since the module takes f32.
    """
    w1, b1 = packed["w1"], packed["b1"]
    w2, b2 = packed["w2"], packed["b2"]
    w3t, b3t = packed["w3t"], packed["b3t"]
    B, in_dim = x.shape
    out_sub = w3t.shape[0]

    # --- batch-tile selection -------------------------------------------------
    # rough per-row VMEM: double-buffered x + out blocks + f32/bf16 intermediates
    per_row_vmem = 2 * in_dim * 4 + 2 * out_sub * 4 + 6 * H1 * 4
    vmem_budget = 12 * 1024 * 1024                       # headroom under v5e's 16 MiB
    tb_cap = max(LANE, (vmem_budget // per_row_vmem) // LANE * LANE)
    tile_b = min(tile_b, tb_cap)

    if B < 2 * LANE:
        tb = B                                           # single (full-extent) tile
    else:
        n_tiles = max(2, pl.cdiv(B, tile_b))             # >=2 tiles -> v7x megacore
        tb = _round_up(pl.cdiv(B, n_tiles), LANE)        # lane-aligned, near-even split
    grid = (pl.cdiv(B, tb),)

    def resident(a):
        # Same block every grid step -> weights/biases stay resident in VMEM.
        return pl.BlockSpec(a.shape, lambda i: (0,) * a.ndim)

    flops = 2 * B * (in_dim * H1 + H1 * H2_PAD + H2_PAD * out_sub)
    bytes_accessed = (
        x.size * x.dtype.itemsize
        + sum(a.size * a.dtype.itemsize for a in (w1, b1, w2, b2, w3t, b3t))
        + out_sub * B * 4
    )

    out_t = pl.pallas_call(
        regret_mlp_kernel,
        out_shape=jax.ShapeDtypeStruct((out_sub, B), jnp.float32),
        grid_spec=pltpu.PrefetchScalarGridSpec(
            num_scalar_prefetch=0,
            grid=grid,
            in_specs=[
                pl.BlockSpec((tb, in_dim), lambda i: (i, 0)),    # x: tiled over batch
                resident(w1), resident(b1),
                resident(w2), resident(b2),
                resident(w3t), resident(b3t),
            ],
            # transposed output: batch on the 128-lane axis -> unmasked stores
            out_specs=pl.BlockSpec((out_sub, tb), lambda i: (0, i)),
        ),
        compiler_params=pltpu.CompilerParams(
            dimension_semantics=("parallel",),           # shard batch tiles across TCs
        ),
        cost_estimate=pl.CostEstimate(
            flops=flops, transcendentals=0, bytes_accessed=bytes_accessed),
    )(x, w1, b1, w2, b2, w3t, b3t)

    # Downstream consumers should take out_t (out_dim rows x B lanes) directly; this
    # transpose only matches the PyTorch [B, out_dim] convention and touches
    # out_sub*4 = 32 B/row, vs the 512 B/row padded layout it replaces.
    return out_t[:out_dim, :].T


def reference_forward(x, params):
    h1 = jnp.maximum(x @ params["w1"] + params["b1"], 0.0)
    h2 = jnp.maximum(h1 @ params["w2"] + params["b2"], 0.0)
    return h2 @ params["w3"] + params["b3"]


if __name__ == "__main__":
    key = jax.random.PRNGKey(0)
    kx, kp = jax.random.split(key)

    batch, input_dim, output_dim = 8, 32, 4
    x = jax.random.normal(kx, (batch, input_dim), jnp.float32)
    params = init_params(kp, input_dim, output_dim)
    packed, out_dim = pack_params(params)

    out = jax.block_until_ready(regret_model_forward(x, packed, out_dim))
    ref = reference_forward(x, params)
    assert out.shape == (batch, output_dim)
    # bf16 MXU inputs with f32 accumulation -> looser tolerance vs the f32 reference.
    assert jnp.allclose(out, ref, atol=2e-2, rtol=2e-2)

    # Exercise the multi-tile + ragged-tail path: B=300 -> 2 tiles of 256 lanes,
    # the second tile has a 44-row real tail (out-of-bounds lanes discarded).
    batch2 = 300
    x2 = jax.random.normal(kx, (batch2, input_dim), jnp.float32)
    out2 = jax.block_until_ready(regret_model_forward(x2, packed, out_dim))
    ref2 = reference_forward(x2, params)
    assert out2.shape == (batch2, output_dim)
    assert jnp.allclose(out2, ref2, atol=2e-2, rtol=2e-2)

    print("KERNEL_OK")
</pallas_src>

<mosaic_0001>
module attributes {stable_mosaic.version = 11 : i64} {
  func.func @regret_mlp_kernel(%arg0: i32, %arg1: memref<8x32xf32, #tpu.memory_space<vmem>>, %arg2: memref<32x128xbf16, #tpu.memory_space<vmem>>, %arg3: memref<1x128xf32, #tpu.memory_space<vmem>>, %arg4: memref<128x128xbf16, #tpu.memory_space<vmem>>, %arg5: memref<1x128xf32, #tpu.memory_space<vmem>>, %arg6: memref<8x128xf32, #tpu.memory_space<vmem>>, %arg7: memref<8x1xf32, #tpu.memory_space<vmem>>, %arg8: memref<8x8xf32, #tpu.memory_space<vmem>>) attributes {dimension_semantics = [#tpu.dimension_semantics<parallel>], iteration_bounds = array<i64: 1>, scalar_prefetch = 0 : i64, scratch_operands = 0 : i64, tpu.core_type = #tpu.core_type<tc>, window_params = [{transform_indices = @transform_0, window_bounds = array<i64: 8, 32>}, {pipeline_mode = #tpu.pipeline_mode<synchronous>, transform_indices = @transform_1, window_bounds = array<i64: 32, 128>}, {pipeline_mode = #tpu.pipeline_mode<synchronous>, transform_indices = @transform_2, window_bounds = array<i64: 1, 128>}, {pipeline_mode = #tpu.pipeline_mode<synchronous>, transform_indices = @transform_3, window_bounds = array<i64: 128, 128>}, {pipeline_mode = #tpu.pipeline_mode<synchronous>, transform_indices = @transform_4, window_bounds = array<i64: 1, 128>}, {pipeline_mode = #tpu.pipeline_mode<synchronous>, transform_indices = @transform_5, window_bounds = array<i64: 8, 128>}, {pipeline_mode = #tpu.pipeline_mode<synchronous>, transform_indices = @transform_6, window_bounds = array<i64: 8, 1>}, {transform_indices = @transform_7, window_bounds = array<i64: 8, 8>}]} {
    %c0 = arith.constant 0 : index
    %c0_0 = arith.constant 0 : index
    %0 = vector.load %arg1[%c0, %c0_0] : memref<8x32xf32, #tpu.memory_space<vmem>>, vector<8x32xf32>
    %1 = arith.truncf %0 : vector<8x32xf32> to vector<8x32xbf16>
    %c0_1 = arith.constant 0 : index
    %c0_2 = arith.constant 0 : index
    %2 = vector.load %arg2[%c0_1, %c0_2] : memref<32x128xbf16, #tpu.memory_space<vmem>>, vector<32x128xbf16>
    %cst = arith.constant dense<0.000000e+00> : vector<8x128xf32>
    %3 = tpu.matmul %1, %2, %cst {dimension_numbers = #tpu.dot_dimension_numbers<[1], [0], [0], [1], [0, 0, 1, 1], [], []>} : vector<8x32xbf16>, vector<32x128xbf16>, vector<8x128xf32> -> vector<8x128xf32>
    %c0_3 = arith.constant 0 : index
    %c0_4 = arith.constant 0 : index
    %4 = vector.load %arg3[%c0_3, %c0_4] : memref<1x128xf32, #tpu.memory_space<vmem>>, vector<1x128xf32>
    %5 = vector.broadcast %4 : vector<1x128xf32> to vector<8x128xf32>
    %6 = arith.addf %3, %5 : vector<8x128xf32>
    %cst_5 = arith.constant 0.000000e+00 : f32
    %7 = vector.broadcast %cst_5 : f32 to vector<8x128xf32>
    %8 = arith.maximumf %6, %7 : vector<8x128xf32>
    %9 = arith.truncf %8 : vector<8x128xf32> to vector<8x128xbf16>
    %c0_6 = arith.constant 0 : index
    %c0_7 = arith.constant 0 : index
    %10 = vector.load %arg4[%c0_6, %c0_7] : memref<128x128xbf16, #tpu.memory_space<vmem>>, vector<128x128xbf16>
    %cst_8 = arith.constant dense<0.000000e+00> : vector<8x128xf32>
    %11 = tpu.matmul %9, %10, %cst_8 {dimension_numbers = #tpu.dot_dimension_numbers<[1], [0], [0], [1], [0, 0, 1, 1], [], []>} : vector<8x128xbf16>, vector<128x128xbf16>, vector<8x128xf32> -> vector<8x128xf32>
    %c0_9 = arith.constant 0 : index
    %c0_10 = arith.constant 0 : index
    %12 = vector.load %arg5[%c0_9, %c0_10] : memref<1x128xf32, #tpu.memory_space<vmem>>, vector<1x128xf32>
    %13 = vector.broadcast %12 : vector<1x128xf32> to vector<8x128xf32>
    %14 = arith.addf %11, %13 : vector<8x128xf32>
    %cst_11 = arith.constant 0.000000e+00 : f32
    %15 = vector.broadcast %cst_11 : f32 to vector<8x128xf32>
    %16 = arith.maximumf %14, %15 : vector<8x128xf32>
    %17 = tpu.transpose %16, [1, 0] : vector<8x128xf32> -> vector<128x8xf32>
    %c0_12 = arith.constant 0 : index
    %c0_13 = arith.constant 0 : index
    %18 = vector.load %arg6[%c0_12, %c0_13] : memref<8x128xf32, #tpu.memory_space<vmem>>, vector<8x128xf32>
    %cst_14 = arith.constant dense<0.000000e+00> : vector<8x8xf32>
    %19 = tpu.matmul %18, %17, %cst_14 {dimension_numbers = #tpu.dot_dimension_numbers<[1], [0], [0], [1], [0, 0, 1, 1], [], []>} : vector<8x128xf32>, vector<128x8xf32>, vector<8x8xf32> -> vector<8x8xf32>
    %c0_15 = arith.constant 0 : index
    %c0_16 = arith.constant 0 : index
    %20 = vector.load %arg7[%c0_15, %c0_16] : memref<8x1xf32, #tpu.memory_space<vmem>>, vector<8x1xf32>
    %21 = vector.broadcast %20 : vector<8x1xf32> to vector<8x8xf32>
    %22 = arith.addf %19, %21 : vector<8x8xf32>
    %c0_17 = arith.constant 0 : index
    %c0_18 = arith.constant 0 : index
    %23 = vector.load %arg8[%c0_17, %c0_18] : memref<8x8xf32, #tpu.memory_space<vmem>>, vector<8x8xf32>
    tpu.vector_store %arg8[%c0_17, %c0_18], %22 {strides = array<i32>} : memref<8x8xf32, #tpu.memory_space<vmem>>, vector<8x8xf32>,
    return
  }
  func.func @transform_0(%arg0: i32) -> (i32, i32) {
    %c0_i32 = arith.constant 0 : i32
    %c0_i32_0 = arith.constant 0 : i32
    return %arg0, %c0_i32 : i32, i32
  }
  func.func @transform_1(%arg0: i32) -> (i32, i32) {
    %c0_i32 = arith.constant 0 : i32
    %c0_i32_0 = arith.constant 0 : i32
    %c0_i32_1 = arith.constant 0 : i32
    return %c0_i32, %c0_i32_0 : i32, i32
  }
  func.func @transform_2(%arg0: i32) -> (i32, i32) {
    %c0_i32 = arith.constant 0 : i32
    %c0_i32_0 = arith.constant 0 : i32
    %c0_i32_1 = arith.constant 0 : i32
    return %c0_i32, %c0_i32_0 : i32, i32
  }
  func.func @transform_3(%arg0: i32) -> (i32, i32) {
    %c0_i32 = arith.constant 0 : i32
    %c0_i32_0 = arith.constant 0 : i32
    %c0_i32_1 = arith.constant 0 : i32
    return %c0_i32, %c0_i32_0 : i32, i32
  }
  func.func @transform_4(%arg0: i32) -> (i32, i32) {
    %c0_i32 = arith.constant 0 : i32
    %c0_i32_0 = arith.constant 0 : i32
    %c0_i32_1 = arith.constant 0 : i32
    return %c0_i32, %c0_i32_0 : i32, i32
  }
  func.func @transform_5(%arg0: i32) -> (i32, i32) {
    %c0_i32 = arith.constant 0 : i32
    %c0_i32_0 = arith.constant 0 : i32
    %c0_i32_1 = arith.constant 0 : i32
    return %c0_i32, %c0_i32_0 : i32, i32
  }
  func.func @transform_6(%arg0: i32) -> (i32, i32) {
    %c0_i32 = arith.constant 0 : i32
    %c0_i32_0 = arith.constant 0 : i32
    %c0_i32_1 = arith.constant 0 : i32
    return %c0_i32, %c0_i32_0 : i32, i32
  }
  func.func @transform_7(%arg0: i32) -> (i32, i32) {
    %c0_i32 = arith.constant 0 : i32
    %c0_i32_0 = arith.constant 0 : i32
    return %c0_i32, %arg0 : i32, i32
  }
}

</mosaic_0001>

<bundles_post_ra>
// kernel: tpu_custom_call.1
= control target key start
LH: loop header
LB: loop body
LE: loop exit
PB: predicated region body
PF: predicated region fallthrough
CT: control target
= control target key end

     0   :  { %12 = vsyncpa [#allocation3], 0  ;;  %s624_s0 = inlined_call_operand.vmem [shape: f32[8,32], index: 0, kind: input, shape index: {}]   ;;  %s625_s1 = inlined_call_operand.hbm [shape: bf16[32,128], index: 1, kind: input, shape index: {}]   ;;  %s626_s2 = inlined_call_operand.hbm [shape: f32[1,128], index: 2, kind: input, shape index: {}]   ;;  %s627_s3 = inlined_call_operand.hbm [shape: bf16[128,128], index: 3, kind: input, shape index: {}]   ;;  %s628_s4 = inlined_call_operand.hbm [shape: f32[1,128], index: 4, kind: input, shape index: {}]   ;;  %s629_s5 = inlined_call_operand.vmem [shape: f32[8,128], index: 5, kind: input, shape index: {}]   ;;  %s630_s6 = inlined_call_operand.vmem [shape: f32[8,1], index: 6, kind: input, shape index: {}]   ;;  %s631_s7 = inlined_call_operand.hbm [shape: f32[8,8], index: 7, kind: output, shape index: {}]  }
   0x1   :  { %13 = vsyncpa [#allocation6], 0 }
   0x2   :  { %14 = vsyncpa [#allocation9], 0 }
   0x3   :  { %15 = vsyncpa [#allocation4], 0  ;;  %s547_s24 = smov [#allocation5]   ;;  %s548_s26 = smov [#allocation2]  }
   0x4   :  { %s36_s25 = sshll.u32 %s547_s24, 4  ;;  %s23_s27 = sshll.u32 %s548_s26, 4  ;;  %s37_s25 = int_to_ptr.vmem [resolvable:$true] %s36_s25  ;;  %s24_s27 = int_to_ptr.vmem [resolvable:$true] %s23_s27 }
   0x5   :  { %s447_s28 = scalar_lea.vmem %s37_s25, 16  ;;  %s451_s29 = scalar_lea.vmem %s37_s25, 32 }
   0x6   :  { %p448_p0 = scmp.ne.s32.totalorder %s37_s25, %s447_s28  ;;  %p452_p1 = scmp.lt.s32.totalorder %s37_s25, %s37_s25 }
   0x7   :  { %p453_p2 = scmp.lt.s32.totalorder %s451_s29, %s447_s28 }
   0x9   :  { %p454_p3 = por %p453_p2, %p452_p1 }
   0xb   :  { %p455_p4 = pnand %p454_p3, %p448_p0 }
   0xd   :  { %458 = shalt.err (!%p455_p4)
}
   0xe   :  { %39 = dma.hbm_to_vmem [thread:$0]  %s626_s2, 16, %s37_s25, [#allocation6]  }
   0xf   :  { %s467_s9 = scalar_lea.vmem %s24_s27, 256  ;;  %p472_p6 = scmp.lt.s32.totalorder %s24_s27, %s24_s27 }
  0x10   :  { %p468_p5 = scmp.ne.s32.totalorder %s24_s27, %s467_s9  ;;  %p473_p7 = scmp.lt.s32.totalorder %s467_s9, %s467_s9 }
  0x12   :  { %p474_p8 = por %p473_p7, %p472_p6 }
  0x14   :  { %p475_p9 = pnand %p474_p8, %p468_p5 }
  0x16   :  { %478 = shalt.err (!%p475_p9)
}
  0x17   :  { %s549_s10 = smov 64   ;;  %s550_s11 = smov 4  }
  0x18   :  { %29 = dma.hbm_to_vmem [thread:$0]  %s625_s1, 256, %s24_s27, [#allocation3], %s549_s10, %s549_s10, %s550_s11  }
  0x19   :  { %s551_s14 = smov [#allocation7]   ;;  %s552_s16 = smov [#allocation8]  }
  0x1a   :  { %s45_s15 = sshll.u32 %s551_s14, 4  ;;  %s58_s17 = sshll.u32 %s552_s16, 4  ;;  %s46_s15 = int_to_ptr.vmem [resolvable:$true] %s45_s15  ;;  %s59_s17 = int_to_ptr.vmem [resolvable:$true] %s58_s17 }
  0x1b   :  { %s487_s2 = scalar_lea.vmem %s46_s15, 1024  ;;  %p492_p11 = scmp.lt.s32.totalorder %s46_s15, %s46_s15 }
  0x1c   :  { %p488_p10 = scmp.ne.s32.totalorder %s46_s15, %s487_s2  ;;  %p493_p12 = scmp.lt.s32.totalorder %s487_s2, %s487_s2 }
  0x1e   :  { %p494_p13 = por %p493_p12, %p492_p11 }
  0x20   :  { %p495_p0 = pnand %p494_p13, %p488_p10 }
  0x22   :  { %498 = shalt.err (!%p495_p0)
}
  0x23   :  { %51 = dma.hbm_to_vmem [thread:$0]  %s627_s3, 1024, %s46_s15, [#allocation6], %s549_s10, %s549_s10, %s550_s11  }
  0x24   :  { %s507_s20 = scalar_lea.vmem %s59_s17, 16  ;;  %s511_s1 = scalar_lea.vmem %s59_s17, 32 }
  0x25   :  { %p508_p1 = scmp.ne.s32.totalorder %s59_s17, %s507_s20  ;;  %p512_p2 = scmp.lt.s32.totalorder %s59_s17, %s59_s17 }
  0x26   :  { %p513_p3 = scmp.lt.s32.totalorder %s511_s1, %s507_s20 }
  0x28   :  { %p514_p4 = por %p513_p3, %p512_p2 }
  0x2a   :  { %p515_p5 = pnand %p514_p4, %p508_p1 }
  0x2c   :  { %518 = shalt.err (!%p515_p5)
}
  0x2d   :  { %61 = dma.hbm_to_vmem [thread:$0]  %s628_s4, 16, %s59_s17, [#allocation9]  }
  0x2e   :  { %539 = dma.done.wait [#allocation3], 256  }
  0x2f   :  { %540 = vsyncadd [#allocation3], 4294967040 }
  0x30   :  { %541 = dma.done.wait [#allocation6], 1040  }
  0x31   :  { %542 = vsyncadd [#allocation6], 4294966256 }
  0x32   :  { %543 = dma.done.wait [#allocation9], 16  }
  0x33   :  { %544 = vsyncadd [#allocation9], 4294967280  ;;  %v553_v0 = vmov 0.0   ;;  %vm554_vm0 = vmmov 0   ;;  %v429_v1 = vld [vmem:[#allocation2 + $0x8] sm:$0xff]   ;;  %v430_v2 = vld [vmem:[#allocation2] sm:$0xff]  }
  0x34   :  { %385 = vmatprep.subr.bf16.mxu0 %v553_v0  ;;  %389 = vmatprep.mubr.msk.bf16.mxu0 %vm554_vm0, %v553_v0  ;;  %v79_v3 = vld [vmem:[%s624_s0] sm:$0xff]  ;;  %v431_v4 = vld [vmem:[#allocation7 + $0x38] sm:$0xff]   ;;  %vm104_vm1 = vcmask 261120   ;;  %v434_v8 = vld [vmem:[#allocation7 + $0x20] sm:$0xff]   ;;  %v555_v22 = vmov 0   ;;  %s556_s26 = smov [#allocation10]  }
  0x35   :  { %393 = vmatprep.subr.bf16.mxu1 %v553_v0  ;;  %409 = vmatprep.mubr.msk.bf16.mxu1 %vm554_vm0, %v553_v0  ;;  %v80_v5 = vpack.c.bf16 %v79_v3, %v79_v3  ;;  %v432_v6 = vld [vmem:[#allocation7 + $0x30] sm:$0xff]   ;;  %v433_v7 = vld [vmem:[#allocation7 + $0x28] sm:$0xff]   ;;  %v435_v9 = vld [vmem:[#allocation7 + $0x18] sm:$0xff]   ;;  %s347_s27 = sshll.u32 %s556_s26, 4  ;;  %vm339_vm2 = vcmask 64512   ;;  %s348_s27 = int_to_ptr.vmem [resolvable:$true] %s347_s27 }
  0x36   :  { %386 = vmatpush3.bf16.msra.mxu0 %v429_v1  ;;  %394 = vmatpush3.bf16.msra.mxu1 %v431_v4  ;;  %v436_v10 = vld [vmem:[#allocation7 + $0x10] sm:$0xff]   ;;  %v437_v11 = vld [vmem:[#allocation7 + $0x8] sm:$0xff]   ;;  %v438_v12 = vld [vmem:[#allocation7] sm:$0xff]   ;;  %p524_p7 = scmp.lt.s32.totalorder %s348_s27, %s348_s27 }
  0x37   :  { %387 = vmatprep.subr.bf16.mxu0 %v553_v0  ;;  %395 = vmatprep.subr.bf16.mxu1 %v553_v0  ;;  %v358_v13 = vld [vmem:[#allocation5] ss:$0 sm:$0xff]  ;;  %v263_v21 = vld [vmem:[%s630_s6] sm:$0xff]  ;;  %v362_v23 = vld [vmem:[#allocation8] ss:$0 sm:$0xff]  ;;  %s519_s6 = scalar_lea.vmem %s348_s27, 128 }
  0x38   :  { %428 = vset.pattern.permute.xlu0 %v555_v22  ;;  %v262_v29 = vld [vmem:[%s629_s5] sm:$0xff]  ;;  %p520_p6 = scmp.ne.s32.totalorder %s348_s27, %s519_s6  ;;  %p525_p8 = scmp.lt.s32.totalorder %s519_s6, %s519_s6 }
  0x39   :  { %266 = vperm.xlu0 %428, %v263_v21  }
  0x3a   :  { %388 = vmatpush3.bf16.msra.mxu0 %v430_v2  ;;  %396 = vmatpush3.bf16.msra.mxu1 %v432_v6  ;;  %p526_p9 = por %p525_p8, %p524_p7 }
  0x3b   :  { %413 = vmatprep.subr.mxu0 %v553_v0  ;;  %397 = vmatprep.subr.bf16.mxu1 %v553_v0 }
  0x3c   :  { %p527_p10 = pnand %p526_p9, %p520_p6 }
  0x3d   :  { %390 = vmatmul.mubr.msk.bf16.vlgmr.msra.gmra.mxu0 %vm104_vm1, %v80_v5 }
  0x3e   :  { %415 = vmatprep.mubr.msk.f32.mxu0 %vm554_vm0, %v553_v0  ;;  %398 = vmatpush3.bf16.msra.mxu1 %v433_v7 }
  0x3f   :  { %399 = vmatprep.subr.bf16.mxu1 %v553_v0 }
  0x42   :  { %400 = vmatpush3.bf16.msra.mxu1 %v434_v8 }
  0x43   :  { %401 = vmatprep.subr.bf16.mxu1 %v553_v0 }
  0x46   :  { %402 = vmatpush3.bf16.msra.mxu1 %v435_v9 }
  0x47   :  { %403 = vmatprep.subr.bf16.mxu1 %v553_v0 }
  0x4a   :  { %404 = vmatpush3.bf16.msra.mxu1 %v436_v10 }
  0x4b   :  { %405 = vmatprep.subr.bf16.mxu1 %v553_v0 }
  0x4e   :  { %406 = vmatpush3.bf16.msra.mxu1 %v437_v11 }
  0x4f   :  { %407 = vmatprep.subr.bf16.mxu1 %v553_v0 }
  0x52   :  { %408 = vmatpush3.bf16.msra.mxu1 %v438_v12 }
  0xb4   :  { %v267_v31 = vpop.permute.xlu0 %266 }
  0xfd   :  { %v142_v14 = vpop.f32.mrf.mxu0 }
  0xfe   :  { %v143_v15 = vadd.f32 %v358_v13, %v142_v14 }
  0xff   :  { %v391_v16 = vpop.f32.mrf.mxu0 }
 0x100   :  { %v148_v17 = vmax.f32 %v143_v15, 0.0 }
 0x101   :  { %v145_v18 = vpop.f32.mrf.mxu0 }
 0x102   :  { %v149_v19 = vpack.c.bf16 %v148_v17, %v148_v17 }
 0x103   :  { %v392_v20 = vpop.f32.mrf.mxu0 }
 0x104   :  { %410 = vmatmul.mubr.bf16.vlgmr.msra.gmra.mxu1 %v149_v19 }
 0x1c4   :  { %v255_v24 = vpop.f32.mrf.mxu1 }
 0x1c5   :  { %v256_v25 = vadd.f32 %v362_v23, %v255_v24 }
 0x1c6   :  { %v411_v26 = vpop.f32.mrf.mxu1 }
 0x1c7   :  { %v261_v27 = vmax.f32 %v256_v25, 0.0 }
 0x1c8   :  { %v258_v28 = vpop.f32.mrf.mxu1 }
 0x1c9   :  { %414 = vmatpush3.xpose.msra.mxu0 %v261_v27 }
 0x1ca   :  { %v412_v30 = vpop.f32.mrf.mxu1 }
 0x1cc   :  { %416 = vmatmul.mubr.f32.vlgmr.msra.gmra.mxu0 %v262_v29 }
 0x28c   :  { %v335_v32 = vpop.f32.mrf.mxu0 }
 0x28d   :  { %v336_v33 = vadd.f32 %v335_v32, %v267_v31 }
 0x28e   :  { %v417_v34 = vpop.f32.mrf.mxu0 }
 0x28f   :  { %340 = vst.msk [vmem:[#allocation10] sm:$0xff] %vm339_vm2, %v336_v33 }
 0x290   :  { %530 = shalt.err (!%p527_p10)
}
 0x291   :  { %350 = dma.vmem_to_hbm [thread:$0]  %s348_s27, 128, %s631_s7, [#allocation4]  }
 0x292   :  { %545 = dma.done.wait [#allocation4], 128  }
 0x293   :  { %546 = vsyncadd [#allocation4], 4294967168 }
 0x294   :  { %354 = vsyncpa [#allocation3], 1 }
 0x295   :  { %355 = vsyncpa [#allocation6], 1 }
 0x296   :  { %356 = vsyncpa [#allocation9], 1 }
 0x297   :  { %357 = vsyncpa [#allocation4], 1 }

</bundles_post_ra>
